<compile_context>
chip_gen: v6e
topology: v6e:2x2x1
jax: 0.10.0
libtpu: 0.0.40
codegen_flags: <defaults>
</compile_context>

<pallas_src>
import functools

import jax
import jax.numpy as jnp
from jax import lax
from jax.experimental import pallas as pl
from jax.experimental.pallas import tpu as pltpu

_OUT_LANES = 128
_OUT_SUBLANES = 8


def _kd_loss_kernel(sl_ref, tl_ref, lab_ref, sf_ref, tf_ref, w_ref, b_ref,
                    out_ref, *, temperature, alpha, beta, total_rows, t_int):
    tile = pl.program_id(0)
    TB, C = sl_ref.shape
    Ds = sf_ref.shape[1]

    t_val = jnp.float32(temperature)
    inv_t = jnp.float32(1.0 / temperature)
    w_kl = jnp.float32(alpha * temperature * temperature / total_rows)
    w_ce = jnp.float32((1.0 - alpha) / total_rows)
    w_mse = jnp.float32(beta / (total_rows * Ds))

    # Row-validity mask for the ragged final tile.  Garbage rows may flow through
    # the math (all (TB, C) reductions are per-row, so they stay isolated) and are
    # discarded by row-level selects before anything crosses rows.
    row = lax.broadcasted_iota(jnp.int32, (TB, 1), 0) + tile * TB
    valid = row < total_rows                                    # (TB, 1) bool

    sl = sl_ref[...].astype(jnp.float32)                        # (TB, C)
    tl = tl_ref[...].astype(jnp.float32)                        # (TB, C)

    # ---- teacher softmax stats at temperature T ----
    tlT = tl * inv_t
    t_shift = tlT - jnp.max(tlT, axis=-1, keepdims=True)
    t_exp = jnp.exp(t_shift)                                    # EUP pass 1
    t_sum = jnp.sum(t_exp, axis=-1, keepdims=True)              # (TB, 1)
    log_tsum = jnp.log(t_sum)

    # ---- student stats at temperature T ----
    slT = sl * inv_t
    s_shiftT = slT - jnp.max(slT, axis=-1, keepdims=True)
    s_expT = jnp.exp(s_shiftT)                                  # EUP pass 2
    log_ssumT = jnp.log(jnp.sum(s_expT, axis=-1, keepdims=True))

    # ---- student stats at temperature 1, reusing the T-scaled max / exp ----
    # max(sl) == T*max(sl/T) and exp(sl - max(sl)) == exp(s_shiftT)**T, so for an
    # integer T the third full-row exp becomes (T-1) cheap VPU multiplies.
    if t_int is not None:
        s_exp1 = s_expT
        for _ in range(t_int - 1):
            s_exp1 = s_exp1 * s_expT
    else:
        s_exp1 = jnp.exp(t_val * s_shiftT)                      # non-integer T fallback
    log_ssum1 = jnp.log(jnp.sum(s_exp1, axis=-1, keepdims=True))

    # ---- per-row KL with the log-sum terms factored out of the (TB, C) math ----
    # KL_row = (1/t_sum) * sum_c t_exp*(t_shift - s_shiftT) + log_ssumT - log_tsum
    kl_inner = jnp.sum(t_exp * (t_shift - s_shiftT), axis=-1, keepdims=True)
    kl_row = kl_inner / t_sum + log_ssumT - log_tsum            # exact (TB,1) divide

    # ---- per-row hard-label CE (no one-hot materialization, no full s_log1) ----
    # CE_row = log_ssum1 - (sl[label] - max(sl)) = log_ssum1 - T * s_shiftT[label]
    cls_ids = lax.broadcasted_iota(jnp.int32, (TB, C), 1)
    label_shiftT = jnp.sum(
        jnp.where(cls_ids == lab_ref[...], s_shiftT, 0.0),
        axis=-1, keepdims=True)
    ce_row = log_ssum1 - t_val * label_shiftT                   # (TB, 1)

    row_term = w_kl * kl_row + w_ce * ce_row
    logit_part = jnp.sum(jnp.where(valid, row_term, 0.0))       # select kills garbage rows

    # ---- feature alignment: proj = teacher_feat @ W (pre-transposed) + b ----
    # Native-dtype MXU feed with f32 accumulation; masking the diff afterwards is
    # sufficient because invalid LHS rows only pollute their own output rows.
    proj = lax.dot_general(
        tf_ref[...], w_ref[...],
        dimension_numbers=(((1,), (0,)), ((), ())),
        preferred_element_type=jnp.float32) + b_ref[...].astype(jnp.float32)
    diff = jnp.where(valid, sf_ref[...].astype(jnp.float32) - proj, 0.0)
    mse_part = w_mse * jnp.sum(diff * diff)

    partial = logit_part + mse_part

    # (8,128)-aligned output tile: partial sum in [0, 0], zeros elsewhere.
    sub = lax.broadcasted_iota(jnp.int32, out_ref.shape, 0)
    lane = lax.broadcasted_iota(jnp.int32, out_ref.shape, 1)
    out_ref[...] = jnp.where((sub == 0) & (lane == 0), partial, 0.0)


def _round_up_8(x):
    return ((int(x) + 7) // 8) * 8


def _physical_vmem_bytes():
    try:
        return int(pltpu.get_tpu_info().vmem_capacity_bytes)
    except Exception:
        return 128 * 1024 * 1024   # v5e/v6e default; v7x reports 64 MiB itself


def extended_distillation_loss(student_logits, teacher_logits, labels,
                               student_feat, teacher_feat,
                               proj_weight, proj_bias,
                               *, temperature=3.0, alpha=0.5, beta=1.0,
                               block_rows=None, vmem_limit_bytes=None,
                               logits_buffers=None):
    """Scalar total loss, matching ExtendedDistillationLoss.forward.

    proj_weight is the nn.Linear weight in its native (student_feat_dim,
    teacher_feat_dim) layout; it is transposed (and dtype-matched to the
    teacher features) exactly once in the wrapper.  The batch-row tile size is
    auto-derived from the class count, dtypes and the chip's VMEM capacity
    unless `block_rows` caps it explicitly.  `logits_buffers` (e.g. 3) opts the
    two logits inputs into deeper pipelining on bandwidth-bound chips (v5e).
    """
    B, C = student_logits.shape
    Ds = student_feat.shape[1]
    Dt = teacher_feat.shape[1]

    # ---- VMEM limit / budget (per TensorCore) ----
    vmem_phys = _physical_vmem_bytes()
    if vmem_limit_bytes is None:
        vmem_limit_bytes = min(int(vmem_phys * 0.75), 100 * 1024 * 1024)
    vmem_limit_bytes = int(vmem_limit_bytes)
    vmem_budget = int(vmem_limit_bytes * 0.8)       # headroom for output / resident tiles

    # ---- auto-derive the batch-row tile size against the VMEM budget ----
    logit_bytes = student_logits.dtype.itemsize
    feat_bytes = teacher_feat.dtype.itemsize
    nbuf = 2 if logits_buffers is None else max(2, int(logits_buffers))
    per_row = (nbuf * 2 * C * logit_bytes                       # pipelined logits buffers
               + 2 * (Ds + Dt) * feat_bytes + 2 * 4             # pipelined feats + labels
               + 8 * C * 4                                      # ~8 live (row, C) f32 temps
               + 6 * (Ds + Dt) * 4)                             # feature-path f32 temps
    tb_budget = max(8, (vmem_budget // max(per_row, 1)) // 8 * 8)
    if block_rows is not None:
        tb_budget = min(tb_budget, max(8, (int(block_rows) // 8) * 8))

    # Keep at least two grid tiles whenever B allows so v7x's two TensorCores both
    # get work (one extra grid step is negligible on single-TC v5e/v6e).
    tb_split = max(8, _round_up_8(pl.cdiv(B, 2)))

    if B <= 8:
        TB = B                                   # tiny batch: one full block
    else:
        TB = min(tb_budget, tb_split)            # always a multiple of 8, always <= B
    grid_b = pl.cdiv(B, TB)

    labels_2d = labels.reshape(B, 1).astype(jnp.int32)
    # One-time layout plumbing: (Ds, Dt) nn.Linear weight -> (Dt, Ds), matmul dtype.
    w_t = jnp.transpose(proj_weight).astype(teacher_feat.dtype)
    bias_2d = proj_bias.reshape(1, Ds)

    t = float(temperature)
    t_round = round(t)
    t_int = int(t_round) if (abs(t - t_round) < 1e-6 and 1 <= t_round <= 8) else None

    kernel = functools.partial(
        _kd_loss_kernel,
        temperature=t, alpha=float(alpha), beta=float(beta),
        total_rows=B, t_int=t_int)

    def row_spec(d, deep=False):
        if deep and logits_buffers is not None and int(logits_buffers) > 2:
            return pl.BlockSpec((TB, d), lambda i: (i, 0),
                                pipeline_mode=pl.Buffered(int(logits_buffers)))
        return pl.BlockSpec((TB, d), lambda i: (i, 0))

    def resident(shape):
        return pl.BlockSpec(shape, lambda i: (0, 0))

    partials = pl.pallas_call(
        kernel,
        out_shape=jax.ShapeDtypeStruct((grid_b * _OUT_SUBLANES, _OUT_LANES), jnp.float32),
        grid=(grid_b,),
        in_specs=[
            row_spec(C, deep=True),    # student_logits    (native dtype)
            row_spec(C, deep=True),    # teacher_logits    (native dtype)
            row_spec(1),               # labels            (int32)
            row_spec(Ds),              # student_feat      (native dtype)
            row_spec(Dt),              # teacher_feat      (native dtype)
            resident((Dt, Ds)),        # projection weight (pre-transposed, resident)
            resident((1, Ds)),         # projection bias   (resident)
        ],
        out_specs=pl.BlockSpec((_OUT_SUBLANES, _OUT_LANES), lambda i: (i, 0)),
        compiler_params=pltpu.CompilerParams(
            dimension_semantics=("parallel",),
            vmem_limit_bytes=vmem_limit_bytes),
    )(student_logits, teacher_logits, labels_2d,
      student_feat, teacher_feat, w_t, bias_2d)

    return jnp.sum(partials)   # tiny XLA finalize of the per-tile partial sums


def _reference(student_logits, teacher_logits, labels, student_feat,
               teacher_feat, proj_weight, proj_bias,
               temperature, alpha, beta):
    T = temperature
    sl = student_logits.astype(jnp.float32)
    tl = teacher_logits.astype(jnp.float32)
    t_probs = jax.nn.softmax(tl / T, axis=-1)
    s_log = jax.nn.log_softmax(sl / T, axis=-1)
    kl = jnp.sum(t_probs * (jnp.log(t_probs) - s_log)) / sl.shape[0] * (T * T)
    s_log1 = jax.nn.log_softmax(sl, axis=-1)
    ce = -jnp.mean(jnp.take_along_axis(s_log1, labels[:, None], axis=-1))
    proj = teacher_feat.astype(jnp.float32) @ proj_weight.T.astype(jnp.float32) \
        + proj_bias.astype(jnp.float32)
    mse = jnp.mean((student_feat.astype(jnp.float32) - proj) ** 2)
    return alpha * kl + (1.0 - alpha) * ce + beta * mse


def _make_inputs(key, B, C, Ds, Dt, dtype=jnp.float32):
    k1, k2, k3, k4, k5, k6, k7 = jax.random.split(key, 7)
    student_logits = jax.random.normal(k1, (B, C), dtype=jnp.float32).astype(dtype)
    teacher_logits = jax.random.normal(k2, (B, C), dtype=jnp.float32).astype(dtype)
    labels = jax.random.randint(k3, (B,), 0, C, dtype=jnp.int32)
    student_feat = jax.random.normal(k4, (B, Ds), dtype=jnp.float32).astype(dtype)
    teacher_feat = jax.random.normal(k5, (B, Dt), dtype=jnp.float32).astype(dtype)
    bound = 1.0 / (Dt ** 0.5)   # nn.Linear default init range (synthetic values)
    proj_weight = jax.random.uniform(k6, (Ds, Dt), minval=-bound, maxval=bound,
                                     dtype=jnp.float32)
    proj_bias = jax.random.uniform(k7, (Ds,), minval=-bound, maxval=bound,
                                   dtype=jnp.float32)
    return (student_logits, teacher_logits, labels, student_feat, teacher_feat,
            proj_weight, proj_bias)


if __name__ == "__main__":
    temperature, alpha, beta = 3.0, 0.5, 1.0
    teacher_feat_dim, student_feat_dim = 128, 64

    key = jax.random.PRNGKey(0)
    k_a, k_b, k_c = jax.random.split(key, 3)

    # --- case 1: single tile (small shapes, matches module defaults) ---
    args = _make_inputs(k_a, 8, 16, student_feat_dim, teacher_feat_dim)
    loss = extended_distillation_loss(*args, temperature=temperature,
                                      alpha=alpha, beta=beta)
    loss = jax.block_until_ready(loss)
    ref = _reference(*args, temperature, alpha, beta)
    assert jnp.allclose(loss, ref, rtol=2e-3, atol=1e-5), (loss, ref)

    # --- case 2: multi-tile grid with a ragged final tile (exercises masking) ---
    args2 = _make_inputs(k_b, 20, 384, student_feat_dim, teacher_feat_dim)
    loss2 = extended_distillation_loss(*args2, temperature=temperature,
                                       alpha=alpha, beta=beta, block_rows=8)
    loss2 = jax.block_until_ready(loss2)
    ref2 = _reference(*args2, temperature, alpha, beta)
    assert jnp.allclose(loss2, ref2, rtol=2e-3, atol=1e-5), (loss2, ref2)

    # --- case 3: bf16 logits/features (native-dtype MXU path, looser tolerance) ---
    args3 = _make_inputs(k_c, 16, 256, student_feat_dim, teacher_feat_dim,
                         dtype=jnp.bfloat16)
    loss3 = extended_distillation_loss(*args3, temperature=temperature,
                                       alpha=alpha, beta=beta)
    loss3 = jax.block_until_ready(loss3)
    ref3 = _reference(*args3, temperature, alpha, beta)
    assert jnp.allclose(loss3, ref3, rtol=5e-2, atol=1e-3), (loss3, ref3)

    print("KERNEL_OK")
</pallas_src>

<mosaic_0001>
module attributes {stable_mosaic.version = 11 : i64} {
  func.func @_kd_loss_kernel(%arg0: i32, %arg1: memref<8x16xf32, #tpu.memory_space<vmem>>, %arg2: memref<8x16xf32, #tpu.memory_space<vmem>>, %arg3: memref<8x1xi32, #tpu.memory_space<vmem>>, %arg4: memref<8x64xf32, #tpu.memory_space<vmem>>, %arg5: memref<8x128xf32, #tpu.memory_space<vmem>>, %arg6: memref<128x64xf32, #tpu.memory_space<vmem>>, %arg7: memref<1x64xf32, #tpu.memory_space<vmem>>, %arg8: memref<8x128xf32, #tpu.memory_space<vmem>>) attributes {dimension_semantics = [#tpu.dimension_semantics<parallel>], iteration_bounds = array<i64: 1>, scalar_prefetch = 0 : i64, scratch_operands = 0 : i64, tpu.core_type = #tpu.core_type<tc>, window_params = [{transform_indices = @transform_0, window_bounds = array<i64: 8, 16>}, {transform_indices = @transform_1, window_bounds = array<i64: 8, 16>}, {transform_indices = @transform_2, window_bounds = array<i64: 8, 1>}, {transform_indices = @transform_3, window_bounds = array<i64: 8, 64>}, {transform_indices = @transform_4, window_bounds = array<i64: 8, 128>}, {pipeline_mode = #tpu.pipeline_mode<synchronous>, transform_indices = @transform_5, window_bounds = array<i64: 128, 64>}, {pipeline_mode = #tpu.pipeline_mode<synchronous>, transform_indices = @transform_6, window_bounds = array<i64: 1, 64>}, {transform_indices = @transform_7, window_bounds = array<i64: 8, 128>}]} {
    %0 = tpu.iota {dimensions = array<i32: 0>} : vector<8x1xi32>
    %c8_i32 = arith.constant 8 : i32
    %1 = arith.muli %arg0, %c8_i32 : i32
    %2 = vector.broadcast %1 : i32 to vector<8x1xi32>
    %3 = arith.addi %0, %2 : vector<8x1xi32>
    %c8_i32_0 = arith.constant 8 : i32
    %4 = vector.broadcast %c8_i32_0 : i32 to vector<8x1xi32>
    %5 = arith.cmpi slt, %3, %4 : vector<8x1xi32>
    %c0 = arith.constant 0 : index
    %c0_1 = arith.constant 0 : index
    %6 = vector.load %arg1[%c0, %c0_1] : memref<8x16xf32, #tpu.memory_space<vmem>>, vector<8x16xf32>
    %c0_2 = arith.constant 0 : index
    %c0_3 = arith.constant 0 : index
    %7 = vector.load %arg2[%c0_2, %c0_3] : memref<8x16xf32, #tpu.memory_space<vmem>>, vector<8x16xf32>
    %cst = arith.constant 0.333333343 : f32
    %8 = vector.broadcast %cst : f32 to vector<8x16xf32>
    %9 = arith.mulf %7, %8 : vector<8x16xf32>
    %cst_4 = arith.constant dense<0xFF800000> : vector<8xf32>
    %10 = vector.multi_reduction <maximumf>, %9, %cst_4 [1] : vector<8x16xf32> to vector<8xf32>
    %11 = vector.shape_cast %10 : vector<8xf32> to vector<8x1xf32>
    %12 = vector.broadcast %11 : vector<8x1xf32> to vector<8x16xf32>
    %13 = arith.subf %9, %12 : vector<8x16xf32>
    %14 = math.exp %13 : vector<8x16xf32>
    %cst_5 = arith.constant dense<0.000000e+00> : vector<8xf32>
    %15 = vector.multi_reduction <add>, %14, %cst_5 [1] : vector<8x16xf32> to vector<8xf32>
    %16 = vector.shape_cast %15 : vector<8xf32> to vector<8x1xf32>
    %17 = math.log %16 : vector<8x1xf32>
    %cst_6 = arith.constant 0.333333343 : f32
    %18 = vector.broadcast %cst_6 : f32 to vector<8x16xf32>
    %19 = arith.mulf %6, %18 : vector<8x16xf32>
    %cst_7 = arith.constant dense<0xFF800000> : vector<8xf32>
    %20 = vector.multi_reduction <maximumf>, %19, %cst_7 [1] : vector<8x16xf32> to vector<8xf32>
    %21 = vector.shape_cast %20 : vector<8xf32> to vector<8x1xf32>
    %22 = vector.broadcast %21 : vector<8x1xf32> to vector<8x16xf32>
    %23 = arith.subf %19, %22 : vector<8x16xf32>
    %24 = math.exp %23 : vector<8x16xf32>
    %cst_8 = arith.constant dense<0.000000e+00> : vector<8xf32>
    %25 = vector.multi_reduction <add>, %24, %cst_8 [1] : vector<8x16xf32> to vector<8xf32>
    %26 = vector.shape_cast %25 : vector<8xf32> to vector<8x1xf32>
    %27 = math.log %26 : vector<8x1xf32>
    %28 = arith.mulf %24, %24 : vector<8x16xf32>
    %29 = arith.mulf %28, %24 : vector<8x16xf32>
    %cst_9 = arith.constant dense<0.000000e+00> : vector<8xf32>
    %30 = vector.multi_reduction <add>, %29, %cst_9 [1] : vector<8x16xf32> to vector<8xf32>
    %31 = vector.shape_cast %30 : vector<8xf32> to vector<8x1xf32>
    %32 = math.log %31 : vector<8x1xf32>
    %33 = arith.subf %13, %23 : vector<8x16xf32>
    %34 = arith.mulf %14, %33 : vector<8x16xf32>
    %cst_10 = arith.constant dense<0.000000e+00> : vector<8xf32>
    %35 = vector.multi_reduction <add>, %34, %cst_10 [1] : vector<8x16xf32> to vector<8xf32>
    %36 = vector.shape_cast %35 : vector<8xf32> to vector<8x1xf32>
    %37 = arith.divf %36, %16 : vector<8x1xf32>
    %38 = arith.addf %37, %27 : vector<8x1xf32>
    %39 = arith.subf %38, %17 : vector<8x1xf32>
    %40 = tpu.iota {dimensions = array<i32: 1>} : vector<8x16xi32>
    %c0_11 = arith.constant 0 : index
    %c0_12 = arith.constant 0 : index
    %41 = vector.load %arg3[%c0_11, %c0_12] : memref<8x1xi32, #tpu.memory_space<vmem>>, vector<8x1xi32>
    %42 = vector.broadcast %41 : vector<8x1xi32> to vector<8x16xi32>
    %43 = arith.cmpi eq, %40, %42 : vector<8x16xi32>
    %cst_13 = arith.constant 0.000000e+00 : f32
    %44 = vector.broadcast %cst_13 : f32 to vector<8x16xf32>
    %45 = arith.select %43, %23, %44 : vector<8x16xi1>, vector<8x16xf32>
    %cst_14 = arith.constant dense<0.000000e+00> : vector<8xf32>
    %46 = vector.multi_reduction <add>, %45, %cst_14 [1] : vector<8x16xf32> to vector<8xf32>
    %47 = vector.shape_cast %46 : vector<8xf32> to vector<8x1xf32>
    %cst_15 = arith.constant 3.000000e+00 : f32
    %48 = vector.broadcast %cst_15 : f32 to vector<8x1xf32>
    %49 = arith.mulf %48, %47 : vector<8x1xf32>
    %50 = arith.subf %32, %49 : vector<8x1xf32>
    %cst_16 = arith.constant 5.625000e-01 : f32
    %51 = vector.broadcast %cst_16 : f32 to vector<8x1xf32>
    %52 = arith.mulf %51, %39 : vector<8x1xf32>
    %cst_17 = arith.constant 6.250000e-02 : f32
    %53 = vector.broadcast %cst_17 : f32 to vector<8x1xf32>
    %54 = arith.mulf %53, %50 : vector<8x1xf32>
    %55 = arith.addf %52, %54 : vector<8x1xf32>
    %cst_18 = arith.constant 0.000000e+00 : f32
    %56 = vector.broadcast %cst_18 : f32 to vector<8x1xf32>
    %57 = arith.select %5, %55, %56 : vector<8x1xi1>, vector<8x1xf32>
    %58 = vector.shape_cast %57 : vector<8x1xf32> to vector<1x8x1xf32>
    %cst_19 = arith.constant dense<0.000000e+00> : vector<1xf32>
    %59 = vector.multi_reduction <add>, %58, %cst_19 [1, 2] : vector<1x8x1xf32> to vector<1xf32>
    %60 = vector.shape_cast %59 : vector<1xf32> to vector<1x1x1xf32>
    %61 = vector.extract %60[0, 0, 0] : f32 from vector<1x1x1xf32>
    %c0_20 = arith.constant 0 : index
    %c0_21 = arith.constant 0 : index
    %62 = vector.load %arg5[%c0_20, %c0_21] : memref<8x128xf32, #tpu.memory_space<vmem>>, vector<8x128xf32>
    %c0_22 = arith.constant 0 : index
    %c0_23 = arith.constant 0 : index
    %63 = vector.load %arg6[%c0_22, %c0_23] : memref<128x64xf32, #tpu.memory_space<vmem>>, vector<128x64xf32>
    %cst_24 = arith.constant dense<0.000000e+00> : vector<8x64xf32>
    %64 = tpu.matmul %62, %63, %cst_24 {dimension_numbers = #tpu.dot_dimension_numbers<[1], [0], [0], [1], [0, 0, 1, 1], [], []>} : vector<8x128xf32>, vector<128x64xf32>, vector<8x64xf32> -> vector<8x64xf32>
    %c0_25 = arith.constant 0 : index
    %c0_26 = arith.constant 0 : index
    %65 = vector.load %arg7[%c0_25, %c0_26] : memref<1x64xf32, #tpu.memory_space<vmem>>, vector<1x64xf32>
    %66 = vector.broadcast %65 : vector<1x64xf32> to vector<8x64xf32>
    %67 = arith.addf %64, %66 : vector<8x64xf32>
    %c0_27 = arith.constant 0 : index
    %c0_28 = arith.constant 0 : index
    %68 = vector.load %arg4[%c0_27, %c0_28] : memref<8x64xf32, #tpu.memory_space<vmem>>, vector<8x64xf32>
    %69 = arith.subf %68, %67 : vector<8x64xf32>
    %cst_29 = arith.constant 0.000000e+00 : f32
    %70 = vector.shape_cast %5 : vector<8x1xi1> to vector<8x1xi1>
    %71 = vector.broadcast %70 : vector<8x1xi1> to vector<8x64xi1>
    %72 = vector.broadcast %cst_29 : f32 to vector<8x64xf32>
    %73 = arith.select %71, %69, %72 : vector<8x64xi1>, vector<8x64xf32>
    %74 = arith.mulf %73, %73 : vector<8x64xf32>
    %75 = vector.shape_cast %74 : vector<8x64xf32> to vector<1x8x64xf32>
    %cst_30 = arith.constant dense<0.000000e+00> : vector<1xf32>
    %76 = vector.multi_reduction <add>, %75, %cst_30 [1, 2] : vector<1x8x64xf32> to vector<1xf32>
    %77 = vector.shape_cast %76 : vector<1xf32> to vector<1x1x1xf32>
    %78 = vector.extract %77[0, 0, 0] : f32 from vector<1x1x1xf32>
    %cst_31 = arith.constant 0.001953125 : f32
    %79 = arith.mulf %cst_31, %78 : f32
    %80 = arith.addf %61, %79 : f32
    %81 = tpu.iota {dimensions = array<i32: 0>} : vector<8x128xi32>
    %82 = tpu.iota {dimensions = array<i32: 1>} : vector<8x128xi32>
    %c0_i32 = arith.constant 0 : i32
    %83 = vector.broadcast %c0_i32 : i32 to vector<8x128xi32>
    %84 = arith.cmpi eq, %81, %83 : vector<8x128xi32>
    %c0_i32_32 = arith.constant 0 : i32
    %85 = vector.broadcast %c0_i32_32 : i32 to vector<8x128xi32>
    %86 = arith.cmpi eq, %82, %85 : vector<8x128xi32>
    %87 = arith.andi %84, %86 : vector<8x128xi1>
    %cst_33 = arith.constant 0.000000e+00 : f32
    %88 = vector.broadcast %80 : f32 to vector<8x128xf32>
    %89 = vector.broadcast %cst_33 : f32 to vector<8x128xf32>
    %90 = arith.select %87, %88, %89 : vector<8x128xi1>, vector<8x128xf32>
    %c0_34 = arith.constant 0 : index
    %c0_35 = arith.constant 0 : index
    %91 = vector.load %arg8[%c0_34, %c0_35] : memref<8x128xf32, #tpu.memory_space<vmem>>, vector<8x128xf32>
    tpu.vector_store %arg8[%c0_34, %c0_35], %90 {strides = array<i32>} : memref<8x128xf32, #tpu.memory_space<vmem>>, vector<8x128xf32>,
    return
  }
  func.func @transform_0(%arg0: i32) -> (i32, i32) {
    %c0_i32 = arith.constant 0 : i32
    %c0_i32_0 = arith.constant 0 : i32
    return %arg0, %c0_i32 : i32, i32
  }
  func.func @transform_1(%arg0: i32) -> (i32, i32) {
    %c0_i32 = arith.constant 0 : i32
    %c0_i32_0 = arith.constant 0 : i32
    return %arg0, %c0_i32 : i32, i32
  }
  func.func @transform_2(%arg0: i32) -> (i32, i32) {
    %c0_i32 = arith.constant 0 : i32
    %c0_i32_0 = arith.constant 0 : i32
    return %arg0, %c0_i32 : i32, i32
  }
  func.func @transform_3(%arg0: i32) -> (i32, i32) {
    %c0_i32 = arith.constant 0 : i32
    %c0_i32_0 = arith.constant 0 : i32
    return %arg0, %c0_i32 : i32, i32
  }
  func.func @transform_4(%arg0: i32) -> (i32, i32) {
    %c0_i32 = arith.constant 0 : i32
    %c0_i32_0 = arith.constant 0 : i32
    return %arg0, %c0_i32 : i32, i32
  }
  func.func @transform_5(%arg0: i32) -> (i32, i32) {
    %c0_i32 = arith.constant 0 : i32
    %c0_i32_0 = arith.constant 0 : i32
    %c0_i32_1 = arith.constant 0 : i32
    return %c0_i32, %c0_i32_0 : i32, i32
  }
  func.func @transform_6(%arg0: i32) -> (i32, i32) {
    %c0_i32 = arith.constant 0 : i32
    %c0_i32_0 = arith.constant 0 : i32
    %c0_i32_1 = arith.constant 0 : i32
    return %c0_i32, %c0_i32_0 : i32, i32
  }
  func.func @transform_7(%arg0: i32) -> (i32, i32) {
    %c0_i32 = arith.constant 0 : i32
    %c0_i32_0 = arith.constant 0 : i32
    return %arg0, %c0_i32 : i32, i32
  }
}

</mosaic_0001>

<bundles_post_ra>
// kernel: tpu_custom_call.1
= control target key start
LH: loop header
LB: loop body
LE: loop exit
PB: predicated region body
PF: predicated region fallthrough
CT: control target
= control target key end

     0   :  { %vm36_vm0 = vcmask 130048   ;;  %v334_v5 = vmov 0   ;;  %v335_v6 = vmov 0.0   ;;  %vm336_vm1 = vmmov 0   ;;  %s468_s0 = inlined_call_operand.vmem [shape: f32[8,16], index: 0, kind: input, shape index: {}]   ;;  %s469_s1 = inlined_call_operand.vmem [shape: f32[8,16], index: 1, kind: input, shape index: {}]   ;;  %s470_s2 = inlined_call_operand.vmem [shape: s32[8,1], index: 2, kind: input, shape index: {}]   ;;  %s471_s3 = inlined_call_operand.vmem [shape: f32[8,64], index: 3, kind: input, shape index: {}]   ;;  %s472_s4 = inlined_call_operand.vmem [shape: f32[8,128], index: 4, kind: input, shape index: {}]   ;;  %s473_s5 = inlined_call_operand.vmem [shape: f32[128,64], index: 5, kind: input, shape index: {}]   ;;  %s474_s6 = inlined_call_operand.vmem [shape: f32[1,64], index: 6, kind: input, shape index: {}]   ;;  %s475_s7 = inlined_call_operand.hbm [shape: f32[8,128], index: 7, kind: output, shape index: {}]  }
   0x1   :  { %v33_v0 = vld [vmem:[%s468_s0] sm:$0xff]  ;;  %298 = vset.pattern.permute.xlu1 %v334_v5  ;;  %255 = vmatprep.subr.mxu0 %v335_v6  ;;  %v120_v7 = vld [vmem:[%s473_s5 + $0x78] sm:$0xff]  ;;  %v119_v8 = vld [vmem:[%s473_s5 + $0x70] sm:$0xff] }
   0x2   :  { %v34_v1 = vld [vmem:[%s469_s1] sm:$0xff]  ;;  %v387_v3 = vmul.f32 0.33333334, %v33_v0  ;;  %256 = vmatpush3.msra.mxu0 %v120_v7  ;;  %v118_v10 = vld [vmem:[%s473_s5 + $0x68] sm:$0xff]  ;;  %287 = vmatprep.mubr.msk.f32.mxu0 %vm336_vm1, %v335_v6  ;;  %v116_v13 = vld [vmem:[%s473_s5 + $0x58] sm:$0xff] }
   0x3   :  { %v78_v2 = vld [vmem:[%s470_s2] sm:$0xff]  ;;  %v389_v4 = vmul.f32 0.33333334, %v34_v1  ;;  %257 = vmatprep.subr.mxu0 %v335_v6  ;;  %299 = vset.pattern.permute.xlu0 %v334_v5 }
   0x4   :  { %80 = vperm.xlu1 %298, %v78_v2   ;;  %v49_v9 = vsel %vm36_vm0, %v387_v3, -inf  ;;  %258 = vmatpush3.msra.mxu0 %v119_v8  ;;  %v117_v12 = vld [vmem:[%s473_s5 + $0x60] sm:$0xff] }
   0x5   :  { %50 = vmax.xlane.f32.xlu0 %v49_v9  ;;  %v37_v11 = vsel %vm36_vm0, %v389_v4, -inf  ;;  %259 = vmatprep.subr.mxu0 %v335_v6 }
   0x6   :  { %260 = vmatpush3.msra.mxu0 %v118_v10 }
   0x7   :  { %261 = vmatprep.subr.mxu0 %v335_v6 }
   0x8   :  { %12 = vsyncpa [#allocation3], 0  ;;  %262 = vmatpush3.msra.mxu0 %v117_v12  ;;  %v115_v14 = vld [vmem:[%s473_s5 + $0x50] sm:$0xff]  ;;  %v114_v15 = vld [vmem:[%s473_s5 + $0x48] sm:$0xff]  ;;  %v27_v32 = vlaneseq  ;;  %vm93_vm3 = vcmask 7168   ;;  %vm204_vm4 = vcmask 523264  }
   0x9   :  { %38 = vmax.xlane.f32.xlu0 %v37_v11  ;;  %263 = vmatprep.subr.mxu0 %v335_v6  ;;  %v113_v16 = vld [vmem:[%s473_s5 + $0x40] sm:$0xff]  ;;  %v112_v17 = vld [vmem:[%s473_s5 + $0x38] sm:$0xff]  ;;  %v111_v18 = vld [vmem:[%s473_s5 + $0x30] sm:$0xff]  ;;  %s337_s15 = smov [#allocation2]  }
   0xa   :  { %264 = vmatpush3.msra.mxu0 %v116_v13  ;;  %v110_v19 = vld [vmem:[%s473_s5 + $0x28] sm:$0xff]  ;;  %v109_v20 = vld [vmem:[%s473_s5 + $0x20] sm:$0xff]  ;;  %v108_v21 = vld [vmem:[%s473_s5 + $0x18] sm:$0xff]  ;;  %v450_v36 = vand.u32 127, %v27_v32  ;;  %s229_s16 = sshll.u32 %s337_s15, 4  ;;  %s230_s16 = int_to_ptr.vmem [resolvable:$true] %s229_s16 }
   0xb   :  { %265 = vmatprep.subr.mxu0 %v335_v6  ;;  %v107_v22 = vld [vmem:[%s473_s5 + $0x10] sm:$0xff]  ;;  %v106_v23 = vld [vmem:[%s473_s5 + $0x8] sm:$0xff]  ;;  %v105_v24 = vld [vmem:[%s473_s5] sm:$0xff]  ;;  %s312_s18 = scalar_lea.vmem %s230_s16, 128  ;;  %p317_p1 = scmp.lt.s32.totalorder %s230_s16, %s230_s16 }
   0xc   :  { %266 = vmatpush3.msra.mxu0 %v115_v14  ;;  %v104_v25 = vld [vmem:[%s472_s4] sm:$0xff]  ;;  %vm218_vm6 = vcmp.eq.s32.totalorder %v450_v36, 0  ;;  %p313_p0 = scmp.ne.s32.totalorder %s230_s16, %s312_s18  ;;  %p318_p2 = scmp.lt.s32.totalorder %s312_s18, %s312_s18 }
   0xd   :  { %267 = vmatprep.subr.mxu0 %v335_v6  ;;  %v237_v54 = vld [vmem:[%s474_s6] ss:$0 sm:$0xff] }
   0xe   :  { %268 = vmatpush3.msra.mxu0 %v114_v15  ;;  %v198_v0 = vld [vmem:[%s471_s3] sm:$0xff]  ;;  %p319_p3 = por %p318_p2, %p317_p1 }
   0xf   :  { %269 = vmatprep.subr.mxu0 %v335_v6 }
  0x10   :  { %270 = vmatpush3.msra.mxu0 %v113_v16  ;;  %p320_p4 = pnand %p319_p3, %p313_p0 }
  0x11   :  { %271 = vmatprep.subr.mxu0 %v335_v6 }
  0x12   :  { %272 = vmatpush3.msra.mxu0 %v112_v17 }
  0x13   :  { %273 = vmatprep.subr.mxu0 %v335_v6 }
  0x14   :  { %274 = vmatpush3.msra.mxu0 %v111_v18 }
  0x15   :  { %275 = vmatprep.subr.mxu0 %v335_v6 }
  0x16   :  { %276 = vmatpush3.msra.mxu0 %v110_v19 }
  0x17   :  { %277 = vmatprep.subr.mxu0 %v335_v6 }
  0x18   :  { %278 = vmatpush3.msra.mxu0 %v109_v20 }
  0x19   :  { %279 = vmatprep.subr.mxu0 %v335_v6 }
  0x1a   :  { %280 = vmatpush3.msra.mxu0 %v108_v21 }
  0x1b   :  { %281 = vmatprep.subr.mxu0 %v335_v6 }
  0x1c   :  { %282 = vmatpush3.msra.mxu0 %v107_v22 }
  0x1d   :  { %283 = vmatprep.subr.mxu0 %v335_v6 }
  0x1e   :  { %284 = vmatpush3.msra.mxu0 %v106_v23 }
  0x1f   :  { %285 = vmatprep.subr.mxu0 %v335_v6 }
  0x20   :  { %286 = vmatpush3.msra.mxu0 %v105_v24 }
  0x21   :  { %288 = vmatmul.mubr.f32.vlgmr.msra.gmra.mxu0 %v104_v25 }
  0x7f   :  { %v81_v40 = vpop.permute.xlu1 %80 }
  0x80   :  { %vm82_vm2 = vcmp.eq.s32.totalorder %v450_v36, %v81_v40 }
  0x8e   :  { %v51_v26 = vpop.xlane.xlu0 %50 }
  0x8f   :  { %v52_v27 = vsub.f32 %v387_v3, %v51_v26  ;;  %v28_v26 = vshrl.u32 %v27_v32, 7 }
  0x91   :  { %v53_v28 = vmul.f32 1.442695, %v52_v27  ;;  %v83_v45 = vsel %vm82_vm2, %v52_v27, 0.0  ;;  %vm217_vm5 = vcmp.eq.s32.totalorder %v28_v26, 0 }
  0x92   :  { %v39_v29 = vpop.xlane.xlu0 %38  ;;  %v84_v46 = vsel %vm36_vm0, %v83_v45, 0.0  ;;  %vm219_vm7 = vmand %vm217_vm5, %vm218_vm6 }
  0x93   :  { %300 = vpow2.f32 %v53_v28  ;;  %v40_v30 = vsub.f32 %v389_v4, %v39_v29 }
  0x95   :  { %v41_v31 = vmul.f32 1.442695, %v40_v30  ;;  %v67_v37 = vsub.f32 %v40_v30, %v52_v27 }
  0x97   :  { %302 = vpow2.f32 %v41_v31 }
  0xa0   :  { %v301_v33 = vpop.eup %300 }
  0xa1   :  { %v55_v34 = vsel %vm36_vm0, %v301_v33, 0.0  ;;  %v60_v35 = vmul.f32 %v301_v33, %v301_v33 }
  0xa2   :  { %56 = vadd.xlane.f32.xlu0 %v55_v34 }
  0xa3   :  { %v61_v38 = vmul.f32 %v301_v33, %v60_v35 }
  0xa4   :  { %v303_v39 = vpop.eup %302 }
  0xa5   :  { %v62_v41 = vsel %vm36_vm0, %v61_v38, 0.0  ;;  %v43_v42 = vsel %vm36_vm0, %v303_v39, 0.0  ;;  %v68_v43 = vmul.f32 %v303_v39, %v67_v37 }
  0xa6   :  { %63 = vadd.xlane.f32.xlu0 %v62_v41  ;;  %44 = vadd.xlane.f32.xlu1 %v43_v42 }
  0xa7   :  { %v69_v44 = vsel %vm36_vm0, %v68_v43, 0.0 }
  0xaa   :  { %70 = vadd.xlane.f32.xlu0 %v69_v44 }
  0xae   :  { %85 = vadd.xlane.f32.xlu0 %v84_v46 }
  0xe1   :  { %v194_v47 = vpop.f32.mrf.mxu0 }
  0xe2   :  { %v195_v61 = vadd.f32 %v237_v54, %v194_v47 }
  0xe3   :  { %v289_v48 = vpop.f32.mrf.mxu0 }
  0xe4   :  { %v199_v5 = vsub.f32 %v198_v0, %v195_v61 }
  0xe6   :  { %v203_v9 = vmul.f32 %v199_v5, %v199_v5 }
  0xe8   :  { %v205_v11 = vsel %vm204_vm4, %v203_v9, 0.0 }
 0x12b   :  { %v57_v49 = vpop.xlane.xlu0 %56 }
 0x12c   :  { %304 = vlog2.f32 %v57_v49 }
 0x12f   :  { %v45_v50 = vpop.xlane.xlu1 %44  ;;  %v64_v51 = vpop.xlane.xlu0 %63 }
 0x130   :  { %306 = vlog2.f32 %v45_v50 }
 0x131   :  { %308 = vrcp.f32 %v45_v50 }
 0x132   :  { %310 = vlog2.f32 %v64_v51 }
 0x133   :  { %v71_v52 = vpop.xlane.xlu0 %70 }
 0x137   :  { %v86_v56 = vpop.xlane.xlu0 %85 }
 0x138   :  { %v87_v63 = vmul.f32 3.0, %v86_v56 }
 0x139   :  { %v305_v53 = vpop.eup %304 }
 0x13a   :  { %v59_v59 = vmul.f32 0.6931472, %v305_v53 }
 0x13d   :  { %v307_v55 = vpop.eup %306 }
 0x13e   :  { %v309_v57 = vpop.eup %308  ;;  %v47_v1 = vmul.f32 0.6931472, %v307_v55 }
 0x13f   :  { %v311_v58 = vpop.eup %310  ;;  %v73_v60 = vmul.f32 %v309_v57, %v71_v52 }
 0x140   :  { %v66_v62 = vmul.f32 0.6931472, %v311_v58 }
 0x141   :  { %v74_v2 = vadd.f32 %v73_v60, %v59_v59 }
 0x142   :  { %v88_v3 = vsub.f32 %v66_v62, %v87_v63 }
 0x143   :  { %v75_v4 = vsub.f32 %v74_v2, %v47_v1 }
 0x144   :  { %v90_v6 = vmul.f32 0.0625, %v88_v3 }
 0x145   :  { %v89_v7 = vmul.f32 0.5625, %v75_v4 }
 0x147   :  { %v91_v8 = vadd.f32 %v90_v6, %v89_v7 }
 0x149   :  { %v94_v10 = vsel %vm93_vm3, %v91_v8, 0.0 }
 0x14a   :  { %95 = vadd.xlane.f32.xlu0 %v94_v10 }
 0x14e   :  { %206 = vadd.xlane.f32.xlu0 %v205_v11 }
 0x1d3   :  { %v96_v12 = vpop.xlane.xlu0 %95 }
 0x1d4   :  { %v97_v13 = vrot.slane %v96_v12, 4 }
 0x1d6   :  { %v98_v14 = vadd.f32 %v97_v13, %v96_v12 }
 0x1d7   :  { %v207_v15 = vpop.xlane.xlu0 %206 }
 0x1d8   :  { %v99_v16 = vrot.slane %v98_v14, 2  ;;  %v208_v17 = vrot.slane %v207_v15, 4 }
 0x1da   :  { %v209_v18 = vadd.f32 %v208_v17, %v207_v15  ;;  %v100_v19 = vadd.f32 %v99_v16, %v98_v14 }
 0x1dc   :  { %v210_v20 = vrot.slane %v209_v18, 2  ;;  %v101_v21 = vrot.slane %v100_v19, 1 }
 0x1de   :  { %v211_v22 = vadd.f32 %v210_v20, %v209_v18  ;;  %v102_v23 = vadd.f32 %v101_v21, %v100_v19 }
 0x1e0   :  { %290 = vpush %v102_v23  ;;  %v212_v24 = vrot.slane %v211_v22, 1 }
 0x1e2   :  { %v213_v25 = vadd.f32 %v212_v24, %v211_v22 }
 0x1e4   :  { %292 = vpush %v213_v25 }
 0x211   :  { %s291_s3 = spop %290 }
 0x215   :  { %s293_s6 = spop %292 }
 0x216   :  { %s215_s14 = smul.f32 0.001953125, %s293_s6 }
 0x218   :  { %s216_s17 = sadd.f32 %s291_s3, %s215_s14 }
 0x21a   :  { %v220_v27 = vstv %s216_s17 }
 0x21b   :  { %v221_v28 = vsel %vm219_vm7, %v220_v27, 0.0 }
 0x21c   :  { %222 = vst [vmem:[#allocation2] sm:$0xff] %v221_v28 }
 0x21d   :  { %323 = shalt.err (!%p320_p4)
}
 0x21e   :  { %232 = dma.vmem_to_hbm [thread:$0]  %s230_s16, 128, %s475_s7, [#allocation3]  }
 0x21f   :  { %332 = dma.done.wait [#allocation3], 128  }
 0x220   :  { %333 = vsyncadd [#allocation3], 4294967168 }
 0x221   :  { %236 = vsyncpa [#allocation3], 1 }

</bundles_post_ra>
